<compile_context>
chip_gen: v6e
topology: v6e:2x2x1
jax: 0.10.0
libtpu: 0.0.40
codegen_flags: <defaults>
</compile_context>

<pallas_src>
import functools

import jax
import jax.numpy as jnp
from jax.experimental import pallas as pl
from jax.experimental.pallas import tpu as pltpu

LANES = 128             # vreg lane width
ACC_ROWS = 64           # accumulator rows: 8 independent f32 vregs (>=8-way ILP)
NUM_CORES = 2           # leading "parallel" grid axis (megacore on v7x; near-free on 1-TC chips)
FAST_PATH_NUMEL = 1 << 18   # below this, pure XLA beats kernel launch + step overhead


def _round_up(x, m):
    return ((x + m - 1) // m) * m


def _masked_sq_sum_kernel(inp_ref, tgt_ref, out_ref, *, ignore_index, rows,
                          block_rows, inner_tiles, needs_edge_mask):
    """Accumulate sum(where(t != ignore, x - t, 0)^2) into the resident out block."""
    p = pl.program_id(0)     # core slice ("parallel")
    i = pl.program_id(1)     # reduction step ("arbitrary"); out block resident across it

    @pl.when(i == 0)
    def _init():
        out_ref[...] = jnp.zeros_like(out_ref)

    def contribution(mask_edge_rows):
        x = inp_ref[...].astype(jnp.float32)
        t = tgt_ref[...]
        keep = t != ignore_index              # native-dtype compare, like torch ne_()
        if mask_edge_rows:
            # Rows past the logical array end (partial boundary block or clamped
            # duplicate block) hold unspecified data: mask them out by index.
            start = (p * inner_tiles + i) * block_rows
            rid = jax.lax.broadcasted_iota(jnp.int32, (block_rows, LANES), 0)
            keep = jnp.logical_and(keep, rid + start < rows)
        d = jnp.where(keep, x - t.astype(jnp.float32), 0.0)
        d2 = d * d
        # Fold (block_rows,128) -> (ACC_ROWS,128): pure vreg-wise VPU adds over
        # 8 independent f32 accumulator vregs (no cross-lane movement).
        return jnp.sum(d2.reshape(block_rows // ACC_ROWS, ACC_ROWS, LANES), axis=0)

    if needs_edge_mask:
        start = (p * inner_tiles + i) * block_rows
        is_full = start + block_rows <= rows

        @pl.when(is_full)
        def _full():
            out_ref[0] += contribution(False)

        @pl.when(jnp.logical_not(is_full))
        def _edge():
            out_ref[0] += contribution(True)
    else:
        out_ref[0] += contribution(False)


def _masking_mse_loss_xla(inp, tgt, *, ignore_index):
    mask = (tgt != ignore_index).astype(jnp.float32)
    x = inp.astype(jnp.float32) * mask
    t = tgt.astype(jnp.float32) * mask
    d = x - t
    return (jnp.sum(d * d) / jnp.float32(inp.size)).astype(jnp.float32)


def masking_mse_loss(inp, tgt, *, ignore_index, block_rows=4096,
                     min_pallas_numel=FAST_PATH_NUMEL):
    """Pallas equivalent of _MaskingLossWrapper(MSELoss(), ignore_index) forward."""
    assert inp.shape == tgt.shape, (inp.shape, tgt.shape)
    assert ignore_index == ignore_index, "ignore_index must not be NaN"
    numel = int(inp.size)

    # Small-input fast path: launch/step overhead dominates below ~256K elements.
    if numel < max(min_pallas_numel, ACC_ROWS * LANES):
        return _masking_mse_loss_xla(inp, tgt, ignore_index=ignore_index)

    flat_i = inp.reshape(-1)
    flat_t = tgt.reshape(-1)

    # Only a (rare) sub-128 tail is padded; block/core raggedness is handled
    # in-kernel, so the common 128-aligned case is a pure bitcast reshape with
    # zero extra HBM traffic.
    pad = (-numel) % LANES
    if pad:
        # TODO(synk): absorb the <128-element tail via a manual DMA to avoid this copy.
        flat_i = jnp.pad(flat_i, (0, pad))
        flat_t = jnp.pad(flat_t, (0, pad), constant_values=ignore_index)
    rows = (numel + pad) // LANES

    isz = jnp.dtype(inp.dtype).itemsize + jnp.dtype(tgt.dtype).itemsize
    # Block size: multiple of ACC_ROWS (also satisfies 8/16/32 sublane packing),
    # no larger than the array, capped so 2 inputs x 2 pipeline buffers stay
    # comfortably inside every generation's scoped VMEM (v5e default = 16 MiB).
    vmem_budget = 20 << 20
    max_br = max(ACC_ROWS, (vmem_budget // (2 * LANES * isz)) // ACC_ROWS * ACC_ROWS)
    br = min(_round_up(block_rows, ACC_ROWS), (rows // ACC_ROWS) * ACC_ROWS, max_br)
    br = max(br, ACC_ROWS)

    num_blocks = pl.cdiv(rows, br)
    inner_tiles = pl.cdiv(num_blocks, NUM_CORES)
    # True if any block is partial or the 2-core grid overshoots num_blocks.
    needs_edge_mask = (NUM_CORES * inner_tiles * br) != rows

    def in_map(p, i):
        # Clamp so overshoot steps (num_blocks % NUM_CORES != 0) re-fetch the
        # last valid block instead of DMA-ing out of bounds; their contribution
        # is masked to exactly zero inside the kernel.
        return (jnp.minimum(p * inner_tiles + i, num_blocks - 1), 0)

    out_bytes = NUM_CORES * ACC_ROWS * LANES * 4
    vmem_limit = max(int(2 * br * LANES * isz * 1.3) + (4 << 20), 16 << 20)

    kernel = functools.partial(
        _masked_sq_sum_kernel, ignore_index=ignore_index, rows=rows,
        block_rows=br, inner_tiles=inner_tiles, needs_edge_mask=needs_edge_mask)

    partials = pl.pallas_call(
        kernel,
        out_shape=jax.ShapeDtypeStruct((NUM_CORES, ACC_ROWS, LANES), jnp.float32),
        grid_spec=pltpu.PrefetchScalarGridSpec(
            num_scalar_prefetch=0,
            grid=(NUM_CORES, inner_tiles),
            in_specs=[pl.BlockSpec((br, LANES), in_map),
                      pl.BlockSpec((br, LANES), in_map)],
            out_specs=pl.BlockSpec((1, ACC_ROWS, LANES), lambda p, i: (p, 0, 0)),
        ),
        compiler_params=pltpu.CompilerParams(
            dimension_semantics=("parallel", "arbitrary"),
            vmem_limit_bytes=vmem_limit,
        ),
        cost_estimate=pl.CostEstimate(
            flops=4 * numel, transcendentals=0,
            bytes_accessed=numel * isz + out_bytes),
    )(flat_i.reshape(rows, LANES), flat_t.reshape(rows, LANES))

    # MSELoss(reduction='mean') divides by the TOTAL element count (including
    # masked-out positions), matching the PyTorch wrapper exactly.
    return (jnp.sum(partials) / jnp.float32(numel)).astype(jnp.float32)


def masking_mse_loss_ref(inp, tgt, *, ignore_index):
    mask = (tgt != ignore_index).astype(jnp.float32)
    x = inp.astype(jnp.float32) * mask
    t = tgt.astype(jnp.float32) * mask
    return jnp.mean((x - t) ** 2)


if __name__ == "__main__":
    ignore_index = -1.0
    key = jax.random.PRNGKey(0)

    def make_case(k, shape, dtype=jnp.float32, p_ignore=0.25):
        k1, k2, k3 = jax.random.split(k, 3)
        inp = jax.random.normal(k1, shape, dtype=dtype)
        tgt = jax.random.normal(k2, shape, dtype=dtype)
        drop = jax.random.bernoulli(k3, p=p_ignore, shape=shape)
        tgt = jnp.where(drop, jnp.asarray(ignore_index, dtype), tgt)
        return inp, tgt

    def check(loss, inp, tgt, rtol=1e-4, atol=1e-6):
        loss = jax.block_until_ready(loss)
        ref = masking_mse_loss_ref(inp, tgt, ignore_index=ignore_index)
        assert jnp.allclose(loss, ref, rtol=rtol, atol=atol), (loss, ref)

    keys = jax.random.split(key, 5)

    # 1) Module-style NCHW shape (small -> pure-XLA fast path).
    inp, tgt = make_case(keys[0], (2, 4, 16, 16))
    check(masking_mse_loss(inp, tgt, ignore_index=ignore_index), inp, tgt)

    # 2) Pallas path, exactly block/core aligned (no edge masking compiled in).
    inp, tgt = make_case(keys[1], (4, 8, 64, 128))      # rows = 2048
    check(masking_mse_loss(inp, tgt, ignore_index=ignore_index,
                           min_pallas_numel=0, block_rows=512), inp, tgt)

    # 3) Pallas path, odd block count + partial boundary block (edge masking +
    #    clamped duplicate block on the second core slice).
    inp, tgt = make_case(keys[2], (5, 8, 125, 128))     # rows = 5000
    check(masking_mse_loss(inp, tgt, ignore_index=ignore_index,
                           min_pallas_numel=0, block_rows=1024), inp, tgt)

    # 4) Pallas path, numel not a multiple of 128 (sub-128 tail pad only).
    inp, tgt = make_case(keys[3], (23, 29, 31, 17))     # numel = 351509
    check(masking_mse_loss(inp, tgt, ignore_index=ignore_index,
                           min_pallas_numel=0, block_rows=1024), inp, tgt)

    # 5) bf16 inputs stay packed through HBM; arithmetic still in f32.
    inp, tgt = make_case(keys[4], (4, 8, 64, 128), dtype=jnp.bfloat16)
    check(masking_mse_loss(inp, tgt, ignore_index=ignore_index,
                           min_pallas_numel=0, block_rows=1024),
          inp, tgt, rtol=1e-3, atol=1e-5)

    print("KERNEL_OK")
</pallas_src>

<mosaic_0001>
module attributes {stable_mosaic.version = 11 : i64} {
  func.func @_masked_sq_sum_kernel(%arg0: i32, %arg1: i32, %arg2: memref<512x128xf32, #tpu.memory_space<vmem>>, %arg3: memref<512x128xf32, #tpu.memory_space<vmem>>, %arg4: memref<1x64x128xf32, #tpu.memory_space<vmem>>) attributes {dimension_semantics = [#tpu.dimension_semantics<parallel>, #tpu.dimension_semantics<arbitrary>], iteration_bounds = array<i64: 2, 2>, scalar_prefetch = 0 : i64, scratch_operands = 0 : i64, tpu.core_type = #tpu.core_type<tc>, window_params = [{transform_indices = @transform_0, window_bounds = array<i64: 512, 128>}, {transform_indices = @transform_1, window_bounds = array<i64: 512, 128>}, {transform_indices = @transform_2, window_bounds = array<i64: 1, 64, 128>}]} {
    %c0_i32 = arith.constant 0 : i32
    %0 = arith.cmpi eq, %arg1, %c0_i32 : i32
    %1 = arith.extui %0 : i1 to i32
    %c0_i32_0 = arith.constant 0 : i32
    %2 = arith.cmpi ne, %1, %c0_i32_0 : i32
    scf.if %2 {
      %cst_12 = arith.constant 0.000000e+00 : f32
      %19 = vector.broadcast %cst_12 : f32 to vector<1x64x128xf32>
      %c0_13 = arith.constant 0 : index
      %c0_14 = arith.constant 0 : index
      %c0_15 = arith.constant 0 : index
      %20 = vector.load %arg4[%c0_13, %c0_14, %c0_15] : memref<1x64x128xf32, #tpu.memory_space<vmem>>, vector<1x64x128xf32>
      tpu.vector_store %arg4[%c0_13, %c0_14, %c0_15], %19 {strides = array<i32>} : memref<1x64x128xf32, #tpu.memory_space<vmem>>, vector<1x64x128xf32>,
    } else {
    }
    %c0 = arith.constant 0 : index
    %c0_1 = arith.constant 0 : index
    %c0_2 = arith.constant 0 : index
    %3 = vector.load %arg4[%c0, %c0_1, %c0_2] : memref<1x64x128xf32, #tpu.memory_space<vmem>>, vector<1x64x128xf32>
    %4 = vector.shape_cast %3 : vector<1x64x128xf32> to vector<64x128xf32>
    %c0_3 = arith.constant 0 : index
    %c0_4 = arith.constant 0 : index
    %5 = vector.load %arg2[%c0_3, %c0_4] : memref<512x128xf32, #tpu.memory_space<vmem>>, vector<512x128xf32>
    %c0_5 = arith.constant 0 : index
    %c0_6 = arith.constant 0 : index
    %6 = vector.load %arg3[%c0_5, %c0_6] : memref<512x128xf32, #tpu.memory_space<vmem>>, vector<512x128xf32>
    %cst = arith.constant -1.000000e+00 : f32
    %7 = vector.broadcast %cst : f32 to vector<512x128xf32>
    %8 = arith.cmpf one, %6, %7 : vector<512x128xf32>
    %9 = arith.subf %5, %6 : vector<512x128xf32>
    %cst_7 = arith.constant 0.000000e+00 : f32
    %10 = vector.broadcast %cst_7 : f32 to vector<512x128xf32>
    %11 = arith.select %8, %9, %10 : vector<512x128xi1>, vector<512x128xf32>
    %12 = arith.mulf %11, %11 : vector<512x128xf32>
    %13 = vector.shape_cast %12 : vector<512x128xf32> to vector<8x64x128xf32>
    %cst_8 = arith.constant dense<0.000000e+00> : vector<64x128xf32>
    %14 = vector.multi_reduction <add>, %13, %cst_8 [0] : vector<8x64x128xf32> to vector<64x128xf32>
    %15 = arith.addf %4, %14 : vector<64x128xf32>
    %c0_9 = arith.constant 0 : index
    %c0_10 = arith.constant 0 : index
    %c0_11 = arith.constant 0 : index
    %16 = vector.load %arg4[%c0_9, %c0_10, %c0_11] : memref<1x64x128xf32, #tpu.memory_space<vmem>>, vector<1x64x128xf32>
    %17 = vector.shape_cast %16 : vector<1x64x128xf32> to vector<64x128xf32>
    %18 = vector.shape_cast %15 : vector<64x128xf32> to vector<1x64x128xf32>
    tpu.vector_store %arg4[%c0_9, %c0_10, %c0_11], %18 {strides = array<i32>} : memref<1x64x128xf32, #tpu.memory_space<vmem>>, vector<1x64x128xf32>,
    return
  }
  func.func @transform_0(%arg0: i32, %arg1: i32) -> (i32, i32) {
    %c2_i32 = arith.constant 2 : i32
    %0 = arith.muli %arg0, %c2_i32 : i32
    %1 = arith.addi %0, %arg1 : i32
    %c3_i32 = arith.constant 3 : i32
    %2 = arith.minsi %1, %c3_i32 : i32
    %c0_i32 = arith.constant 0 : i32
    %c0_i32_0 = arith.constant 0 : i32
    return %2, %c0_i32 : i32, i32
  }
  func.func @transform_1(%arg0: i32, %arg1: i32) -> (i32, i32) {
    %c2_i32 = arith.constant 2 : i32
    %0 = arith.muli %arg0, %c2_i32 : i32
    %1 = arith.addi %0, %arg1 : i32
    %c3_i32 = arith.constant 3 : i32
    %2 = arith.minsi %1, %c3_i32 : i32
    %c0_i32 = arith.constant 0 : i32
    %c0_i32_0 = arith.constant 0 : i32
    return %2, %c0_i32 : i32, i32
  }
  func.func @transform_2(%arg0: i32, %arg1: i32) -> (i32, i32, i32) {
    %c0_i32 = arith.constant 0 : i32
    %c0_i32_0 = arith.constant 0 : i32
    %c0_i32_1 = arith.constant 0 : i32
    return %arg0, %c0_i32, %c0_i32_0 : i32, i32, i32
  }
}

</mosaic_0001>

<bundles_post_ra>
// kernel: tpu_custom_call.1
= control target key start
LH: loop header
LB: loop body
LE: loop exit
PB: predicated region body
PF: predicated region fallthrough
CT: control target
= control target key end

     0   :  { %s1661_s0 = inlined_call_operand.hbm [shape: f32[2048,128], index: 0, kind: input, shape index: {}]   ;;  %s1662_s1 = inlined_call_operand.hbm [shape: f32[2048,128], index: 1, kind: input, shape index: {}]   ;;  %s1663_s2 = inlined_call_operand.hbm [shape: f32[2,64,128], index: 2, kind: output, shape index: {}]  }
   0x1   :  { %1670 = sst [smem:[#allocation17_spill]] %s1661_s0 }
   0x2   :  { %7 = vsyncpa [#allocation3], 0 }
   0x3   :  { %9 = vsyncpa [#allocation3 + $0x1], 0 }
   0x4   :  { %10 = vsyncpa [#allocation6], 0 }
   0x5   :  { %12 = vsyncpa [#allocation6 + $0x1], 0 }
   0x6   :  { %13 = vsyncpa [#allocation4], 0 }
   0x7   :  { %15 = vsyncpa [#allocation4 + $0x1], 0  ;;  %s1191_s9 = smov 0   ;;  %s1193_s10 = smov 0  }
   0x8   :  { %s1195_s11 = smov 0   ;;  %s1197_s12 = smov 0  }
   0x9   :  { %s1199_s13 = smov 0   ;;  %s1201_s14 = smov 0  }
   0xa   :  { %s1203_s15 = smov 0   ;;  %s1205_s16 = smov 0  }
   0xb   :  { %s1207_s17 = smov 0   ;;  %s1209_s18 = smov 0  }
   0xc   :  { %s1211_s19 = smov 0  }
   0xd LB: > { %1671 = sst [smem:[#allocation11_spill]] %s1146_s14  ;;  %s845_s20 = sadd.s32 4294967295, %s1166_s19   ;;  %s1166_s19 = sphi %s1211_s19, %s21_s19   ;;  %s1162_s18 = sphi %s1209_s18, %s1690_s18   ;;  %s1158_s17 = sphi %s1207_s17, %s1689_s17   ;;  %s1154_s16 = sphi %s1205_s16, %s1688_s16   ;;  %s1150_s15 = sphi %s1203_s15, %s1687_s15   ;;  %s1146_s14 = sphi %s1201_s14, %s1686_s14   ;;  %s1142_s13 = sphi %s1199_s13, %s1695_s13   ;;  %s1138_s12 = sphi %s1197_s12, %s1694_s12   ;;  %s1134_s11 = sphi %s1195_s11, %s1693_s11   ;;  %s1130_s10 = sphi %s1193_s10, %s1692_s10   ;;  %s1126_s9 = sphi %s1191_s9, %s1691_s9  }
   0xe   : > { %1672 = sst [smem:[#allocation12_spill]] %s1158_s17  ;;  %s846_s21 = sadd.s32 4294967294, %s1166_s19  }
   0xf   : > { %1673 = sst [smem:[#allocation13_spill]] %s1162_s18  ;;  %s30_s22 = sadd.s32 1, %s1158_s17 }
  0x10   : > { %s33_s23 = sadd.s32 1, %s1162_s18  ;;  %p31_p0 = scmp.ge.s32.totalorder %s30_s22, 2 }
  0x11   : > { %s847_s24 = sshll.u32 %s1162_s18, 1  ;;  %s48_s26 = sadd.s32 1, %s1146_s14 }
  0x12   : > { %s38_s25 = sadd.s32 %s1158_s17, %s847_s24  ;;  %s1697_s22 = smov (%p31_p0, %s30_s22), 0 }
  0x13   : > { %1674 = sst [smem:[#allocation14_spill]] %s1697_s22  ;;  %s1699_s23 = smov (!%p31_p0, %s33_s23), %s1162_s18 }
  0x14   : > { %p39_p1 = scmp.lt.s32.totalorder %s38_s25, 3  ;;  %p55_p2 = scmp.ne.s32.totalorder %s1146_s14, %s1142_s13 }
  0x15   : > { %p35_p3 = scmp.ge.s32.totalorder %s1699_s23, 2  ;;  %p56_p4 = scmp.eq.s32.totalorder %s1166_s19, 0 }
  0x16   : > { %s1701_s25 = smov (!%p39_p1, %s38_s25), 3  ;;  %p61_p6 = scmp.ne.s32.totalorder %s1142_s13, %s1138_s12 }
  0x17   : > { %s1703_s23 = smov (%p35_p3, %s1699_s23), 0  ;;  %p1263_p5 = por %p56_p4, %p55_p2 }
  0x18   : > { %1675 = sst [smem:[#allocation15_spill]] %s1703_s23  ;;  %s848_s28 = sshll.u32 %s1703_s23, 1 }
  0x19   : > { %p62_p7 = scmp.eq.s32.totalorder %s845_s20, 0  ;;  %s42_s29 = sadd.s32 %s848_s28, %s1697_s22 }
  0x1a   : > { %s105_s30 = ssub.s32 %s1162_s18, %s1703_s23  ;;  %p43_p8 = scmp.lt.s32.totalorder %s42_s29, 3 }
  0x1b   : > { %p1275_p9 = por %p62_p7, %p61_p6  ;;  %p106_p10 = scmp.eq.s32.totalorder %s105_s30, 0 }
  0x1c   : > { %s108_s4 = sadd.s32 1, %s1134_s11  ;;  %s1705_s29 = smov (!%p43_p8, %s42_s29), 3 }
  0x1d   : > { %s1281_s5 = scalar_select %p106_p10, %s1134_s11, %s108_s4  }
  0x1e   : > { %s45_s6 = ssub.s32 %s1701_s25, %s1705_s29  ;;  %p118_p11 = scmp.ne.s32.totalorder %s1134_s11, %s1130_s10 }
  0x1f   : > { %p46_p12 = scmp.eq.s32.totalorder %s45_s6, 0  ;;  %p119_p13 = scmp.eq.s32.totalorder %s845_s20, 3 }
  0x20   : > { %p124_p0 = scmp.ne.s32.totalorder %s1130_s10, %s1126_s9  ;;  %p125_p1 = scmp.eq.s32.totalorder %s846_s21, 3 }
  0x21   : > { %s1293_s7 = scalar_select %p46_p12, %s1146_s14, %s48_s26  }
  0x22   : > { %p1295_p2 = por %p119_p13, %p118_p11  ;;  %p1299_p3 = por %p125_p1, %p124_p0 }
  0x23   : > { %1678 = sst [smem:[#allocation16_spill]] %s1293_s7  ;;  %p891_p4 = scmp.lt.s32.totalorder %s1166_s19, 4 }
  0x24   : > { %s1305_s24 = sand.u32 1, %s1146_s14   ;;  %s1666_s28 = sshll.u32 %s1701_s25, 13 }
  0x25   : > { %s853_s20 = sshll.u32 %s1305_s24, 9  ;;  %s1681_s0 = sld [smem:[#allocation17_spill]] }
  0x26   : > { %s149_s30 = scalar_lea.vmem [#allocation2], %s853_s20  ;;  %p1316_p6 = pnand %p891_p4, %p1263_p5 }
  0x27   : > { %s160_s4 = sshll.u32 %s149_s30, 4  ;;  %s146_s23 = scalar_lea.sflag [#allocation3], %s1305_s24  ;;  %s161_s4 = int_to_ptr.vmem [resolvable:$true] %s160_s4 }
  0x28   : > { %p988_p7 = pneg %p1316_p6  ;;  %s999_s22 = scalar_lea.vmem %s161_s4, 8192 }
  0x29   : > { %p1000_p8 = scmp.ne.s32.totalorder %s161_s4, %s999_s22  ;;  %s1168_s29 = smov [#allocation2]  }
  0x2a   : > { %s1004_s21 = sshll.u32 %s1168_s29, 4  ;;  %s1005_s21 = int_to_ptr.vmem [resolvable:$false] %s1004_s21 }
  0x2b   : > { %s159_s26 = scalar_lea.hbm %s1681_s0, %s1666_s28  ;;  %p1002_p10 = pnand %p1000_p8, %p988_p7 }
  0x2c   : > { %s1006_s27 = scalar_lea.vmem %s1005_s21, 16384  ;;  %p1007_p5 = scmp.lt.s32.totalorder %s161_s4, %s1005_s21 }
  0x2d   : > { %p1003_p11 = pneg %p1002_p10  ;;  %p1008_p12 = scmp.lt.s32.totalorder %s1006_s27, %s999_s22 }
  0x2f   : > { %p1009_p13 = por %p1008_p12, %p1007_p5 }
  0x31   : > { %p1010_p0 = pnand %p1009_p13, %p1003_p11 }
  0x33   : > { %1013 = shalt.err (!%p1010_p0)
}
  0x34   : > { %s1169_s30 = smov 128   ;;  %s1170_s28 = smov 8  }
  0x35   : > { %883 = dma.hbm_to_vmem [thread:$0]  (!%p1316_p6), %s159_s26, 8192, %s161_s4, %s146_s23, %s1169_s30, %s1169_s30, %s1170_s28  }
  0x36   : > { %p861_p1 = scmp.ge.s32.totalorder %s1166_s19, 1  ;;  %p193_p4 = scmp.lt.s32.totalorder %s1166_s19, 5 }
  0x37   : > { %s1684_s22 = sshll.u32 %s1701_s25, 13  ;;  %s174_s18 = scalar_lea.vmem [#allocation5], %s853_s20 }
  0x38   : > { %p1330_p8 = pnand %p861_p1, %p193_p4  ;;  %s184_s0 = scalar_lea.hbm %s1662_s1, %s1684_s22 }
  0x39   : > { %s185_s17 = sshll.u32 %s174_s18, 4  ;;  %s171_s7 = scalar_lea.sflag [#allocation6], %s1305_s24  ;;  %s186_s17 = int_to_ptr.vmem [resolvable:$true] %s185_s17 }
  0x3a   : > { %s1027_s14 = scalar_lea.vmem %s186_s17, 8192  ;;  %s1171_s23 = smov [#allocation5]  }
  0x3b   : > { %p1028_p10 = scmp.ne.s32.totalorder %s186_s17, %s1027_s14  ;;  %s1032_s26 = sshll.u32 %s1171_s23, 4  ;;  %s1033_s26 = int_to_ptr.vmem [resolvable:$false] %s1032_s26 }
  0x3c   : > { %s1034_s4 = scalar_lea.vmem %s1033_s26, 16384  ;;  %p1035_p12 = scmp.lt.s32.totalorder %s186_s17, %s1033_s26 }
  0x3d   : > { %p1030_p11 = pnand %p1028_p10, %p988_p7  ;;  %p1036_p13 = scmp.lt.s32.totalorder %s1034_s4, %s1027_s14 }
  0x3f   : > { %p1031_p5 = pneg %p1030_p11  ;;  %p1037_p0 = por %p1036_p13, %p1035_p12 }
  0x41   : > { %p1038_p1 = pnand %p1037_p0, %p1031_p5 }
  0x43   : > { %1041 = shalt.err (!%p1038_p1)
}
  0x44   : > { %886 = dma.hbm_to_vmem [thread:$0]  (!%p1316_p6), %s184_s0, 8192, %s186_s17, %s171_s7, %s1169_s30, %s1169_s30, %s1170_s28  }
  0x45   : > { %197 = sbr.rel (%p1330_p8) target bundleno = 201 (0xc9), region = 28  ;;  %s199_s18 = sand.u32 (!%p1330_p8), 1, %s1142_s13  }
  0x46   : > { %s862_s25 = sshll.u32 (!%p1330_p8), %s199_s18, 9  ;;  %s200_s24 = scalar_lea.sflag (!%p1330_p8), [#allocation3], %s199_s18 }
  0x47   : > { %s1348_s20 = scalar_lea.vmem (!%p1330_p8), [#allocation2], %s862_s25 }
  0x4a   : > { %1113 = dma.done.wait (%p1275_p9), %s200_s24, 8192  }
  0x4b   : > { %1115 = vsyncadd (%p1275_p9), %s200_s24, 4294959104  ;;  %s209_s14 = scalar_lea.sflag [#allocation6], %s199_s18  ;;  %s1354_s22 = scalar_lea.vmem [#allocation5], %s862_s25 }
  0x4c   : > { %1117 = dma.done.wait (%p1275_p9), %s209_s14, 8192  }
  0x4d   : > { %1119 = vsyncadd (%p1275_p9), %s209_s14, 4294959104  ;;  %s235_s0 = sand.u32 1, %s1130_s10   ;;  %p865_p6 = scmp.ne.s32.totalorder %s1150_s15, 0 }
  0x4e   : > { %s864_s17 = sshll.u32 %s235_s0, 6 }
  0x4f   : > { %s1363_s7 = scalar_lea.vmem [#allocation7], %s864_s17  ;;  %251 = sbr.rel (%p865_p6) target bundleno = 89 (0x59), region = 40 }
  0x54   : > { %v1172_v0 = vmov 0.0  }
  0x55   : > { %252 = vst [vmem:[%s1363_s7] sm:$0xff] %v1172_v0  ;;  %253 = vst [vmem:[%s1363_s7 + $0x8] sm:$0xff] %v1172_v0 }
  0x56   : > { %254 = vst [vmem:[%s1363_s7 + $0x10] sm:$0xff] %v1172_v0  ;;  %255 = vst [vmem:[%s1363_s7 + $0x18] sm:$0xff] %v1172_v0 }
  0x57   : > { %256 = vst [vmem:[%s1363_s7 + $0x20] sm:$0xff] %v1172_v0  ;;  %257 = vst [vmem:[%s1363_s7 + $0x28] sm:$0xff] %v1172_v0 }
  0x58   : > { %258 = vst [vmem:[%s1363_s7 + $0x30] sm:$0xff] %v1172_v0  ;;  %259 = vst [vmem:[%s1363_s7 + $0x38] sm:$0xff] %v1172_v0 }
  0x59 PF: > { %v268_v1 = vld [vmem:[%s1348_s20] sm:$0xff]  ;;  %v269_v33 = vld [vmem:[%s1348_s20 + $0x8] sm:$0xff]  ;;  %s873_s15 = sshll.u32 %s1154_s16, 10  ;;  %s738_s3 = sshll.u32 %s1363_s7, 4  ;;  %s1596_s3 = int_to_ptr.vmem [resolvable:$true] %s738_s3 }
  0x5a   : > { %v276_v2 = vld [vmem:[%s1348_s20 + $0x40] sm:$0xff]  ;;  %v277_v34 = vld [vmem:[%s1348_s20 + $0x48] sm:$0xff]  ;;  %s1594_s30 = scalar_lea.hbm %s1663_s2, %s873_s15  ;;  %s1601_s29 = scalar_lea.sflag [#allocation4], %s235_s0 }
  0x5b   : > { %v284_v3 = vld [vmem:[%s1348_s20 + $0x80] sm:$0xff]  ;;  %v333_v35 = vld [vmem:[%s1354_s22 + $0x8] sm:$0xff]  ;;  %s1042_s21 = scalar_lea.vmem %s1596_s3, 1024  ;;  %s1173_s16 = smov [#allocation7]  }
  0x5c   : > { %v292_v4 = vld [vmem:[%s1348_s20 + $0xc0] sm:$0xff]  ;;  %v341_v36 = vld [vmem:[%s1354_s22 + $0x48] sm:$0xff]  ;;  %vm397_vm8 = vcmp.ne.f32.partialorder %v333_v35, -1.0  ;;  %v461_v59 = vsub.f32 %v269_v33, %v333_v35  ;;  %v286_v33 = vld [vmem:[%s1348_s20 + $0x90] sm:$0xff]  ;;  %p1043_p9 = scmp.ne.s32.totalorder %s1596_s3, %s1042_s21  ;;  %s1046_s27 = sshll.u32 %s1173_s16, 4  ;;  %s1047_s27 = int_to_ptr.vmem [resolvable:$false] %s1046_s27 }
  0x5d   : > { %v300_v5 = vld [vmem:[%s1348_s20 + $0x100] sm:$0xff]  ;;  %v285_v41 = vld [vmem:[%s1348_s20 + $0x88] sm:$0xff]  ;;  %vm405_vm9 = vcmp.ne.f32.partialorder %v341_v36, -1.0  ;;  %v469_v60 = vsub.f32 %v277_v34, %v341_v36  ;;  %v294_v35 = vld [vmem:[%s1348_s20 + $0xd0] sm:$0xff]  ;;  %s1048_s23 = scalar_lea.vmem %s1047_s27, 2048  ;;  %p1049_p8 = scmp.lt.s32.totalorder %s1596_s3, %s1047_s27 }
  0x5e   : > { %v308_v6 = vld [vmem:[%s1348_s20 + $0x140] sm:$0xff]  ;;  %v349_v42 = vld [vmem:[%s1354_s22 + $0x88] sm:$0xff]  ;;  %v302_v36 = vld [vmem:[%s1348_s20 + $0x110] sm:$0xff]  ;;  %p1044_p7 = pnand %p1043_p9, %p1295_p2  ;;  %p1050_p10 = scmp.lt.s32.totalorder %s1048_s23, %s1042_s21 }
  0x5f   : > { %v316_v7 = vld [vmem:[%s1348_s20 + $0x180] sm:$0xff]  ;;  %v357_v43 = vld [vmem:[%s1354_s22 + $0xc8] sm:$0xff]  ;;  %vm413_vm10 = vcmp.ne.f32.partialorder %v349_v42, -1.0  ;;  %v477_v61 = vsub.f32 %v285_v41, %v349_v42  ;;  %v326_v41 = vld [vmem:[%s1348_s20 + $0x1d0] sm:$0xff] }
  0x60   : > { %v324_v8 = vld [vmem:[%s1348_s20 + $0x1c0] sm:$0xff]  ;;  %v365_v44 = vld [vmem:[%s1354_s22 + $0x108] sm:$0xff]  ;;  %vm421_vm11 = vcmp.ne.f32.partialorder %v357_v43, -1.0  ;;  %p1045_p4 = pneg %p1044_p7  ;;  %p1051_p11 = por %p1050_p10, %p1049_p8 }
  0x61   : > { %v332_v9 = vld [vmem:[%s1354_s22] sm:$0xff]  ;;  %v373_v49 = vld [vmem:[%s1354_s22 + $0x148] sm:$0xff]  ;;  %vm429_vm12 = vcmp.ne.f32.partialorder %v365_v44, -1.0 }
  0x62   : > { %v340_v10 = vld [vmem:[%s1354_s22 + $0x40] sm:$0xff]  ;;  %vm396_vm0 = vcmp.ne.f32.partialorder %v332_v9, -1.0  ;;  %v460_v15 = vsub.f32 %v268_v1, %v332_v9  ;;  %v381_v50 = vld [vmem:[%s1354_s22 + $0x188] sm:$0xff]  ;;  %vm437_vm13 = vcmp.ne.f32.partialorder %v373_v49, -1.0  ;;  %p1052_p5 = pnand %p1051_p11, %p1045_p4 }
  0x63   : > { %v348_v11 = vld [vmem:[%s1354_s22 + $0x80] sm:$0xff]  ;;  %vm404_vm1 = vcmp.ne.f32.partialorder %v340_v10, -1.0  ;;  %v468_v18 = vsub.f32 %v276_v2, %v340_v10  ;;  %v389_v51 = vld [vmem:[%s1354_s22 + $0x1c8] sm:$0xff]  ;;  %vm445_vm14 = vcmp.ne.f32.partialorder %v381_v50, -1.0 }
  0x64   : > { %v356_v12 = vld [vmem:[%s1354_s22 + $0xc0] sm:$0xff]  ;;  %vm412_vm2 = vcmp.ne.f32.partialorder %v348_v11, -1.0  ;;  %v476_v19 = vsub.f32 %v284_v3, %v348_v11  ;;  %v524_v25 = vsel %vm396_vm0, %v460_v15, 0.0  ;;  %v293_v53 = vld [vmem:[%s1348_s20 + $0xc8] sm:$0xff]  ;;  %vm453_vm15 = vcmp.ne.f32.partialorder %v389_v51, -1.0 }
  0x65   : > { %v364_v13 = vld [vmem:[%s1354_s22 + $0x100] sm:$0xff]  ;;  %vm420_vm3 = vcmp.ne.f32.partialorder %v356_v12, -1.0  ;;  %v484_v20 = vsub.f32 %v292_v4, %v356_v12  ;;  %v532_v26 = vsel %vm404_vm1, %v468_v18, 0.0  ;;  %v588_v37 = vmul.f32 %v524_v25, %v524_v25  ;;  %v301_v54 = vld [vmem:[%s1348_s20 + $0x108] sm:$0xff] }
  0x66   : > { %v372_v14 = vld [vmem:[%s1354_s22 + $0x140] sm:$0xff]  ;;  %vm428_vm4 = vcmp.ne.f32.partialorder %v364_v13, -1.0  ;;  %v492_v21 = vsub.f32 %v300_v5, %v364_v13  ;;  %v540_v27 = vsel %vm412_vm2, %v476_v19, 0.0  ;;  %v596_v38 = vmul.f32 %v532_v26, %v532_v26  ;;  %v309_v55 = vld [vmem:[%s1348_s20 + $0x148] sm:$0xff]  ;;  %v334_v13 = vld [vmem:[%s1354_s22 + $0x10] sm:$0xff] }
  0x67   : > { %v380_v16 = vld [vmem:[%s1354_s22 + $0x180] sm:$0xff]  ;;  %vm436_vm5 = vcmp.ne.f32.partialorder %v372_v14, -1.0  ;;  %v500_v22 = vsub.f32 %v308_v6, %v372_v14  ;;  %v548_v28 = vsel %vm420_vm3, %v484_v20, 0.0  ;;  %v604_v39 = vmul.f32 %v540_v27, %v540_v27  ;;  %v317_v56 = vld [vmem:[%s1348_s20 + $0x188] sm:$0xff]  ;;  %v342_v14 = vld [vmem:[%s1354_s22 + $0x50] sm:$0xff] }
  0x68   : > { %v388_v17 = vld [vmem:[%s1354_s22 + $0x1c0] sm:$0xff]  ;;  %vm444_vm6 = vcmp.ne.f32.partialorder %v380_v16, -1.0  ;;  %v508_v23 = vsub.f32 %v316_v7, %v380_v16  ;;  %v556_v29 = vsel %vm428_vm4, %v492_v21, 0.0  ;;  %v612_v40 = vmul.f32 %v548_v28, %v548_v28  ;;  %v325_v57 = vld [vmem:[%s1348_s20 + $0x1c8] sm:$0xff]  ;;  %v350_v19 = vld [vmem:[%s1354_s22 + $0x90] sm:$0xff] }
  0x69   : > { %vm452_vm7 = vcmp.ne.f32.partialorder %v388_v17, -1.0  ;;  %v516_v24 = vsub.f32 %v324_v8, %v388_v17  ;;  %v564_v30 = vsel %vm436_vm5, %v500_v22, 0.0  ;;  %v620_v45 = vmul.f32 %v556_v29, %v556_v29  ;;  %v358_v20 = vld [vmem:[%s1354_s22 + $0xd0] sm:$0xff] }
  0x6a   : > { %v572_v31 = vsel %vm444_vm6, %v508_v23, 0.0  ;;  %v628_v46 = vmul.f32 %v564_v30, %v564_v30  ;;  %v652_v52 = vadd.f32 %v596_v38, %v588_v37  ;;  %v485_v62 = vsub.f32 %v293_v53, %v357_v43  ;;  %v366_v21 = vld [vmem:[%s1354_s22 + $0x110] sm:$0xff]  ;;  %v260_v38 = vld [vmem:[%s1363_s7] sm:$0xff] }
  0x6b   : > { %v580_v32 = vsel %vm452_vm7, %v516_v24, 0.0  ;;  %v636_v47 = vmul.f32 %v572_v31, %v572_v31  ;;  %v493_v63 = vsub.f32 %v301_v54, %v365_v44  ;;  %v501_v0 = vsub.f32 %v309_v55, %v373_v49  ;;  %v374_v26 = vld [vmem:[%s1354_s22 + $0x150] sm:$0xff] }
  0x6c   : > { %v1401_v48 = vmul.f32 %v580_v32, %v580_v32  ;;  %v653_v58 = vadd.f32 %v652_v52, %v604_v39  ;;  %v509_v2 = vsub.f32 %v317_v56, %v381_v50  ;;  %v517_v3 = vsub.f32 %v325_v57, %v389_v51  ;;  %v382_v27 = vld [vmem:[%s1354_s22 + $0x190] sm:$0xff] }
  0x6d   : > { %v525_v4 = vsel %vm397_vm8, %v461_v59, 0.0  ;;  %v533_v5 = vsel %vm405_vm9, %v469_v60, 0.0  ;;  %v541_v6 = vsel %vm413_vm10, %v477_v61, 0.0  ;;  %v549_v7 = vsel %vm421_vm11, %v485_v62, 0.0  ;;  %v390_v28 = vld [vmem:[%s1354_s22 + $0x1d0] sm:$0xff]  ;;  %v335_v62 = vld [vmem:[%s1354_s22 + $0x18] sm:$0xff] }
  0x6e   : > { %v654_v1 = vadd.f32 %v653_v58, %v612_v40  ;;  %v557_v8 = vsel %vm429_vm12, %v493_v63, 0.0  ;;  %v565_v10 = vsel %vm437_vm13, %v501_v0, 0.0  ;;  %v573_v11 = vsel %vm445_vm14, %v509_v2, 0.0  ;;  %v270_v31 = vld [vmem:[%s1348_s20 + $0x10] sm:$0xff]  ;;  %v343_v63 = vld [vmem:[%s1354_s22 + $0x58] sm:$0xff] }
  0x6f   : > { %v581_v12 = vsel %vm453_vm15, %v517_v3, 0.0  ;;  %v589_v15 = vmul.f32 %v525_v4, %v525_v4  ;;  %v597_v16 = vmul.f32 %v533_v5, %v533_v5  ;;  %v605_v17 = vmul.f32 %v541_v6, %v541_v6  ;;  %v278_v32 = vld [vmem:[%s1348_s20 + $0x50] sm:$0xff]  ;;  %v351_v4 = vld [vmem:[%s1354_s22 + $0x98] sm:$0xff] }
  0x70   : > { %v655_v9 = vadd.f32 %v654_v1, %v620_v45  ;;  %v613_v18 = vmul.f32 %v549_v7, %v549_v7  ;;  %v621_v23 = vmul.f32 %v557_v8, %v557_v8  ;;  %v629_v24 = vmul.f32 %v565_v10, %v565_v10  ;;  %v310_v37 = vld [vmem:[%s1348_s20 + $0x150] sm:$0xff]  ;;  %v359_v5 = vld [vmem:[%s1354_s22 + $0xd8] sm:$0xff]  ;;  %v261_v7 = vld [vmem:[%s1363_s7 + $0x8] sm:$0xff] }
  0x71   : > { %v1424_v25 = vmul.f32 %v573_v11, %v573_v11  ;;  %v1429_v29 = vmul.f32 %v581_v12, %v581_v12  ;;  %v659_v30 = vadd.f32 %v597_v16, %v589_v15  ;;  %vm398_vm0 = vcmp.ne.f32.partialorder %v334_v13, -1.0  ;;  %v318_v40 = vld [vmem:[%s1348_s20 + $0x190] sm:$0xff]  ;;  %v367_v6 = vld [vmem:[%s1354_s22 + $0x118] sm:$0xff] }
  0x72   : > { %v656_v22 = vadd.f32 %v655_v9, %v628_v46  ;;  %vm406_vm1 = vcmp.ne.f32.partialorder %v342_v14, -1.0  ;;  %vm414_vm2 = vcmp.ne.f32.partialorder %v350_v19, -1.0  ;;  %vm422_vm3 = vcmp.ne.f32.partialorder %v358_v20, -1.0  ;;  %v271_v12 = vld [vmem:[%s1348_s20 + $0x18] sm:$0xff] }
  0x73   : > { %vm430_vm4 = vcmp.ne.f32.partialorder %v366_v21, -1.0  ;;  %v660_v39 = vadd.f32 %v659_v30, %v605_v17  ;;  %vm438_vm5 = vcmp.ne.f32.partialorder %v374_v26, -1.0  ;;  %vm446_vm6 = vcmp.ne.f32.partialorder %v382_v27, -1.0 }
  0x74   : > { %v657_v34 = vadd.f32 %v656_v22, %v636_v47  ;;  %vm454_vm7 = vcmp.ne.f32.partialorder %v390_v28, -1.0  ;;  %v462_v43 = vsub.f32 %v270_v31, %v334_v13  ;;  %v470_v44 = vsub.f32 %v278_v32, %v342_v14  ;;  %v375_v13 = vld [vmem:[%s1354_s22 + $0x158] sm:$0xff] }
  0x75   : > { %v478_v45 = vsub.f32 %v286_v33, %v350_v19  ;;  %v661_v46 = vadd.f32 %v660_v39, %v613_v18  ;;  %v486_v47 = vsub.f32 %v294_v35, %v358_v20  ;;  %v494_v49 = vsub.f32 %v302_v36, %v366_v21  ;;  %v383_v14 = vld [vmem:[%s1354_s22 + $0x198] sm:$0xff] }
  0x76   : > { %v658_v42 = vadd.f32 %v657_v34, %v1401_v48  ;;  %v502_v50 = vsub.f32 %v310_v37, %v374_v26  ;;  %v510_v52 = vsub.f32 %v318_v40, %v382_v27  ;;  %v518_v53 = vsub.f32 %v326_v41, %v390_v28  ;;  %v279_v18 = vld [vmem:[%s1348_s20 + $0x58] sm:$0xff] }
  0x77   : > { %v526_v54 = vsel %vm398_vm0, %v462_v43, 0.0  ;;  %v662_v55 = vadd.f32 %v661_v46, %v621_v23  ;;  %v534_v48 = vsel %vm406_vm1, %v470_v44, 0.0  ;;  %v542_v56 = vsel %vm414_vm2, %v478_v45, 0.0  ;;  %v287_v19 = vld [vmem:[%s1348_s20 + $0x98] sm:$0xff] }
  0x78   : > { %v708_v51 = vadd.f32 %v658_v42, %v260_v38  ;;  %v550_v57 = vsel %vm422_vm3, %v486_v47, 0.0  ;;  %v558_v58 = vsel %vm430_vm4, %v494_v49, 0.0  ;;  %v566_v59 = vsel %vm438_vm5, %v502_v50, 0.0  ;;  %v391_v20 = vld [vmem:[%s1354_s22 + $0x1d8] sm:$0xff]  ;;  %v336_v47 = vld [vmem:[%s1354_s22 + $0x20] sm:$0xff] }
  0x79   : > { %v574_v60 = vsel %vm446_vm6, %v510_v52, 0.0  ;;  %v582_v61 = vsel %vm454_vm7, %v518_v53, 0.0  ;;  %v663_v0 = vadd.f32 %v662_v55, %v629_v24  ;;  %v590_v1 = vmul.f32 %v526_v54, %v526_v54  ;;  %v295_v21 = vld [vmem:[%s1348_s20 + $0xd8] sm:$0xff]  ;;  %v344_v49 = vld [vmem:[%s1354_s22 + $0x60] sm:$0xff] }
  0x7a   : > { %716 = vst [vmem:[%s1363_s7] sm:$0xff] %v708_v51  ;;  %v598_v2 = vmul.f32 %v534_v48, %v534_v48  ;;  %v606_v3 = vmul.f32 %v542_v56, %v542_v56  ;;  %v614_v8 = vmul.f32 %v550_v57, %v550_v57  ;;  %v622_v9 = vmul.f32 %v558_v58, %v558_v58  ;;  %v303_v22 = vld [vmem:[%s1348_s20 + $0x118] sm:$0xff]  ;;  %v352_v54 = vld [vmem:[%s1354_s22 + $0xa0] sm:$0xff]  ;;  %v262_v56 = vld [vmem:[%s1363_s7 + $0x10] sm:$0xff] }
  0x7b   : > { %v630_v10 = vmul.f32 %v566_v59, %v566_v59  ;;  %v638_v11 = vmul.f32 %v574_v60, %v574_v60  ;;  %v664_v15 = vadd.f32 %v663_v0, %v1424_v25  ;;  %v1460_v16 = vmul.f32 %v582_v61, %v582_v61  ;;  %v311_v26 = vld [vmem:[%s1348_s20 + $0x158] sm:$0xff]  ;;  %v360_v55 = vld [vmem:[%s1354_s22 + $0xe0] sm:$0xff] }
  0x7c   : > { %v666_v17 = vadd.f32 %v598_v2, %v590_v1  ;;  %vm399_vm8 = vcmp.ne.f32.partialorder %v335_v62, -1.0  ;;  %vm407_vm9 = vcmp.ne.f32.partialorder %v343_v63, -1.0  ;;  %vm415_vm10 = vcmp.ne.f32.partialorder %v351_v4, -1.0  ;;  %v319_v25 = vld [vmem:[%s1348_s20 + $0x198] sm:$0xff]  ;;  %v368_v48 = vld [vmem:[%s1354_s22 + $0x120] sm:$0xff] }
  0x7d   : > { %vm423_vm11 = vcmp.ne.f32.partialorder %v359_v5, -1.0  ;;  %vm431_vm12 = vcmp.ne.f32.partialorder %v367_v6, -1.0  ;;  %v665_v23 = vadd.f32 %v664_v15, %v1429_v29  ;;  %v327_v27 = vld [vmem:[%s1348_s20 + $0x1d8] sm:$0xff]  ;;  %vm439_vm13 = vcmp.ne.f32.partialorder %v375_v13, -1.0  ;;  %v272_v61 = vld [vmem:[%s1348_s20 + $0x20] sm:$0xff] }
  0x7e   : > { %v667_v24 = vadd.f32 %v666_v17, %v606_v3  ;;  %vm447_vm14 = vcmp.ne.f32.partialorder %v383_v14, -1.0  ;;  %vm455_vm15 = vcmp.ne.f32.partialorder %v391_v20, -1.0  ;;  %v463_v28 = vsub.f32 %v271_v12, %v335_v62  ;;  %v376_v62 = vld [vmem:[%s1354_s22 + $0x160] sm:$0xff] }
  0x7f   : > { %v471_v30 = vsub.f32 %v279_v18, %v343_v63  ;;  %v479_v31 = vsub.f32 %v287_v19, %v351_v4  ;;  %v709_v32 = vadd.f32 %v665_v23, %v261_v7  ;;  %v487_v34 = vsub.f32 %v295_v21, %v359_v5  ;;  %v384_v63 = vld [vmem:[%s1354_s22 + $0x1a0] sm:$0xff] }
  0x80   : > { %v668_v33 = vadd.f32 %v667_v24, %v614_v8  ;;  %v495_v35 = vsub.f32 %v303_v22, %v367_v6  ;;  %v503_v36 = vsub.f32 %v311_v26, %v375_v13  ;;  %v511_v37 = vsub.f32 %v319_v25, %v383_v14  ;;  %v280_v3 = vld [vmem:[%s1348_s20 + $0x60] sm:$0xff] }
  0x81   : > { %v519_v29 = vsub.f32 %v327_v27, %v391_v20  ;;  %v527_v38 = vsel %vm399_vm8, %v463_v28, 0.0  ;;  %717 = vst [vmem:[%s1363_s7 + $0x8] sm:$0xff] %v709_v32  ;;  %v535_v40 = vsel %vm407_vm9, %v471_v30, 0.0  ;;  %v543_v41 = vsel %vm415_vm10, %v479_v31, 0.0  ;;  %v288_v4 = vld [vmem:[%s1348_s20 + $0xa0] sm:$0xff] }
  0x82   : > { %v669_v39 = vadd.f32 %v668_v33, %v622_v9  ;;  %v551_v42 = vsel %vm423_vm11, %v487_v34, 0.0  ;;  %v559_v43 = vsel %vm431_vm12, %v495_v35, 0.0  ;;  %v567_v44 = vsel %vm439_vm13, %v503_v36, 0.0  ;;  %v392_v5 = vld [vmem:[%s1354_s22 + $0x1e0] sm:$0xff]  ;;  %v337_v33 = vld [vmem:[%s1354_s22 + $0x28] sm:$0xff] }
  0x83   : > { %v575_v45 = vsel %vm447_vm14, %v511_v37, 0.0  ;;  %v583_v46 = vsel %vm455_vm15, %v519_v29, 0.0  ;;  %v591_v51 = vmul.f32 %v527_v38, %v527_v38  ;;  %v599_v52 = vmul.f32 %v535_v40, %v535_v40  ;;  %v296_v6 = vld [vmem:[%s1348_s20 + $0xe0] sm:$0xff]  ;;  %v345_v34 = vld [vmem:[%s1354_s22 + $0x68] sm:$0xff] }
  0x84   : > { %v670_v50 = vadd.f32 %v669_v39, %v630_v10  ;;  %v607_v53 = vmul.f32 %v543_v41, %v543_v41  ;;  %v615_v57 = vmul.f32 %v551_v42, %v551_v42  ;;  %v623_v58 = vmul.f32 %v559_v43, %v559_v43  ;;  %v304_v7 = vld [vmem:[%s1348_s20 + $0x120] sm:$0xff]  ;;  %v353_v38 = vld [vmem:[%s1354_s22 + $0xa8] sm:$0xff]  ;;  %v263_v41 = vld [vmem:[%s1363_s7 + $0x18] sm:$0xff] }
  0x85   : > { %v631_v59 = vmul.f32 %v567_v44, %v567_v44  ;;  %v639_v60 = vmul.f32 %v575_v45, %v575_v45  ;;  %v1489_v1 = vmul.f32 %v583_v46, %v583_v46  ;;  %v673_v2 = vadd.f32 %v599_v52, %v591_v51  ;;  %v312_v10 = vld [vmem:[%s1348_s20 + $0x160] sm:$0xff]  ;;  %v361_v39 = vld [vmem:[%s1354_s22 + $0xe8] sm:$0xff] }
  0x86   : > { %v671_v0 = vadd.f32 %v670_v50, %v638_v11  ;;  %vm400_vm0 = vcmp.ne.f32.partialorder %v336_v47, -1.0  ;;  %vm408_vm1 = vcmp.ne.f32.partialorder %v344_v49, -1.0  ;;  %vm416_vm2 = vcmp.ne.f32.partialorder %v352_v54, -1.0  ;;  %v320_v11 = vld [vmem:[%s1348_s20 + $0x1a0] sm:$0xff]  ;;  %v369_v40 = vld [vmem:[%s1354_s22 + $0x128] sm:$0xff] }
  0x87   : > { %vm424_vm3 = vcmp.ne.f32.partialorder %v360_v55, -1.0  ;;  %vm432_vm4 = vcmp.ne.f32.partialorder %v368_v48, -1.0  ;;  %v674_v9 = vadd.f32 %v673_v2, %v607_v53  ;;  %v328_v12 = vld [vmem:[%s1348_s20 + $0x1e0] sm:$0xff]  ;;  %vm440_vm5 = vcmp.ne.f32.partialorder %v376_v62, -1.0  ;;  %v273_v46 = vld [vmem:[%s1348_s20 + $0x28] sm:$0xff] }
  0x88   : > { %v672_v8 = vadd.f32 %v671_v0, %v1460_v16  ;;  %vm448_vm6 = vcmp.ne.f32.partialorder %v384_v63, -1.0  ;;  %vm456_vm7 = vcmp.ne.f32.partialorder %v392_v5, -1.0  ;;  %v464_v13 = vsub.f32 %v272_v61, %v336_v47  ;;  %v377_v47 = vld [vmem:[%s1354_s22 + $0x168] sm:$0xff] }
  0x89   : > { %v472_v14 = vsub.f32 %v280_v3, %v344_v49  ;;  %v480_v15 = vsub.f32 %v288_v4, %v352_v54  ;;  %v675_v18 = vadd.f32 %v674_v9, %v615_v57  ;;  %v488_v19 = vsub.f32 %v296_v6, %v360_v55  ;;  %v385_v49 = vld [vmem:[%s1354_s22 + $0x1a8] sm:$0xff] }
  0x8a   : > { %v710_v17 = vadd.f32 %v672_v8, %v262_v56  ;;  %v496_v20 = vsub.f32 %v304_v7, %v368_v48  ;;  %v504_v21 = vsub.f32 %v312_v10, %v376_v62  ;;  %v512_v22 = vsub.f32 %v320_v11, %v384_v63  ;;  %v281_v53 = vld [vmem:[%s1348_s20 + $0x68] sm:$0xff] }
  0x8b   : > { %v520_v16 = vsub.f32 %v328_v12, %v392_v5  ;;  %v528_v23 = vsel %vm400_vm0, %v464_v13, 0.0  ;;  %v676_v24 = vadd.f32 %v675_v18, %v623_v58  ;;  %v536_v26 = vsel %vm408_vm1, %v472_v14, 0.0  ;;  %v289_v54 = vld [vmem:[%s1348_s20 + $0xa8] sm:$0xff] }
  0x8c   : > { %718 = vst [vmem:[%s1363_s7 + $0x10] sm:$0xff] %v710_v17  ;;  %v544_v25 = vsel %vm416_vm2, %v480_v15, 0.0  ;;  %v552_v27 = vsel %vm424_vm3, %v488_v19, 0.0  ;;  %v560_v28 = vsel %vm432_vm4, %v496_v20, 0.0  ;;  %v568_v30 = vsel %vm440_vm5, %v504_v21, 0.0  ;;  %v393_v55 = vld [vmem:[%s1354_s22 + $0x1e8] sm:$0xff] }
  0x8d   : > { %v576_v31 = vsel %vm448_vm6, %v512_v22, 0.0  ;;  %v584_v32 = vsel %vm456_vm7, %v520_v16, 0.0  ;;  %v677_v35 = vadd.f32 %v676_v24, %v631_v59  ;;  %v592_v36 = vmul.f32 %v528_v23, %v528_v23  ;;  %v297_v48 = vld [vmem:[%s1348_s20 + $0xe8] sm:$0xff]  ;;  %v338_v22 = vld [vmem:[%s1354_s22 + $0x30] sm:$0xff] }
  0x8e   : > { %v600_v37 = vmul.f32 %v536_v26, %v536_v26  ;;  %v608_v29 = vmul.f32 %v544_v25, %v544_v25  ;;  %v616_v42 = vmul.f32 %v552_v27, %v552_v27  ;;  %v624_v43 = vmul.f32 %v560_v28, %v560_v28  ;;  %v305_v56 = vld [vmem:[%s1348_s20 + $0x128] sm:$0xff]  ;;  %v346_v16 = vld [vmem:[%s1354_s22 + $0x70] sm:$0xff] }
  0x8f   : > { %v632_v44 = vmul.f32 %v568_v30, %v568_v30  ;;  %v640_v45 = vmul.f32 %v576_v31, %v576_v31  ;;  %v678_v50 = vadd.f32 %v677_v35, %v639_v60  ;;  %v1518_v51 = vmul.f32 %v584_v32, %v584_v32  ;;  %v313_v59 = vld [vmem:[%s1348_s20 + $0x168] sm:$0xff]  ;;  %v354_v23 = vld [vmem:[%s1354_s22 + $0xb0] sm:$0xff] }
  0x90   : > { %v680_v52 = vadd.f32 %v600_v37, %v592_v36  ;;  %vm401_vm8 = vcmp.ne.f32.partialorder %v337_v33, -1.0  ;;  %vm409_vm9 = vcmp.ne.f32.partialorder %v345_v34, -1.0  ;;  %vm417_vm10 = vcmp.ne.f32.partialorder %v353_v38, -1.0  ;;  %v321_v60 = vld [vmem:[%s1348_s20 + $0x1a8] sm:$0xff]  ;;  %v274_v25 = vld [vmem:[%s1348_s20 + $0x30] sm:$0xff]  ;;  %v264_v37 = vld [vmem:[%s1363_s7 + $0x20] sm:$0xff] }
  0x91   : > { %vm425_vm11 = vcmp.ne.f32.partialorder %v361_v39, -1.0  ;;  %vm433_vm12 = vcmp.ne.f32.partialorder %v369_v40, -1.0  ;;  %v679_v57 = vadd.f32 %v678_v50, %v1489_v1  ;;  %v329_v61 = vld [vmem:[%s1348_s20 + $0x1e8] sm:$0xff]  ;;  %vm441_vm13 = vcmp.ne.f32.partialorder %v377_v47, -1.0  ;;  %v362_v27 = vld [vmem:[%s1354_s22 + $0xf0] sm:$0xff] }
  0x92   : > { %v681_v58 = vadd.f32 %v680_v52, %v608_v29  ;;  %vm449_vm14 = vcmp.ne.f32.partialorder %v385_v49, -1.0  ;;  %vm457_vm15 = vcmp.ne.f32.partialorder %v393_v55, -1.0  ;;  %v465_v62 = vsub.f32 %v273_v46, %v337_v33  ;;  %v370_v28 = vld [vmem:[%s1354_s22 + $0x130] sm:$0xff] }
  0x93   : > { %v473_v63 = vsub.f32 %v281_v53, %v345_v34  ;;  %v481_v0 = vsub.f32 %v289_v54, %v353_v38  ;;  %v711_v2 = vadd.f32 %v679_v57, %v263_v41  ;;  %v489_v4 = vsub.f32 %v297_v48, %v361_v39  ;;  %v282_v34 = vld [vmem:[%s1348_s20 + $0x70] sm:$0xff] }
  0x94   : > { %v682_v3 = vadd.f32 %v681_v58, %v616_v42  ;;  %v497_v5 = vsub.f32 %v305_v56, %v369_v40  ;;  %v505_v6 = vsub.f32 %v313_v59, %v377_v47  ;;  %v513_v7 = vsub.f32 %v321_v60, %v385_v49  ;;  %v290_v35 = vld [vmem:[%s1348_s20 + $0xb0] sm:$0xff] }
  0x95   : > { %v521_v8 = vsub.f32 %v329_v61, %v393_v55  ;;  %v529_v1 = vsel %vm401_vm8, %v465_v62, 0.0  ;;  %719 = vst [vmem:[%s1363_s7 + $0x18] sm:$0xff] %v711_v2  ;;  %v537_v10 = vsel %vm409_vm9, %v473_v63, 0.0  ;;  %v545_v11 = vsel %vm417_vm10, %v481_v0, 0.0  ;;  %v378_v36 = vld [vmem:[%s1354_s22 + $0x170] sm:$0xff] }
  0x96   : > { %v683_v9 = vadd.f32 %v682_v3, %v624_v43  ;;  %v553_v12 = vsel %vm425_vm11, %v489_v4, 0.0  ;;  %v561_v13 = vsel %vm433_vm12, %v497_v5, 0.0  ;;  %v569_v14 = vsel %vm441_vm13, %v505_v6, 0.0  ;;  %v298_v38 = vld [vmem:[%s1348_s20 + $0xf0] sm:$0xff]  ;;  %v275_v5 = vld [vmem:[%s1348_s20 + $0x38] sm:$0xff] }
  0x97   : > { %v577_v15 = vsel %vm449_vm14, %v513_v7, 0.0  ;;  %v585_v17 = vsel %vm457_vm15, %v521_v8, 0.0  ;;  %v593_v19 = vmul.f32 %v529_v1, %v529_v1  ;;  %v601_v20 = vmul.f32 %v537_v10, %v537_v10  ;;  %v306_v39 = vld [vmem:[%s1348_s20 + $0x130] sm:$0xff]  ;;  %v339_v6 = vld [vmem:[%s1354_s22 + $0x38] sm:$0xff] }
  0x98   : > { %v684_v18 = vadd.f32 %v683_v9, %v632_v44  ;;  %v609_v21 = vmul.f32 %v545_v11, %v545_v11  ;;  %v617_v24 = vmul.f32 %v553_v12, %v553_v12  ;;  %v625_v26 = vmul.f32 %v561_v13, %v561_v13  ;;  %v314_v42 = vld [vmem:[%s1348_s20 + $0x170] sm:$0xff]  ;;  %v347_v7 = vld [vmem:[%s1354_s22 + $0x78] sm:$0xff]  ;;  %v265_v13 = vld [vmem:[%s1363_s7 + $0x28] sm:$0xff] }
  0x99   : > { %v633_v31 = vmul.f32 %v569_v14, %v569_v14  ;;  %v641_v32 = vmul.f32 %v577_v15, %v577_v15  ;;  %v687_v33 = vadd.f32 %v601_v20, %v593_v19  ;;  %v649_v29 = vmul.f32 %v585_v17, %v585_v17  ;;  %v386_v43 = vld [vmem:[%s1354_s22 + $0x1b0] sm:$0xff]  ;;  %v283_v10 = vld [vmem:[%s1348_s20 + $0x78] sm:$0xff] }
  0x9a   : > { %v685_v30 = vadd.f32 %v684_v18, %v640_v45  ;;  %vm402_vm0 = vcmp.ne.f32.partialorder %v338_v22, -1.0  ;;  %vm410_vm1 = vcmp.ne.f32.partialorder %v346_v16, -1.0  ;;  %vm418_vm2 = vcmp.ne.f32.partialorder %v354_v23, -1.0  ;;  %v394_v44 = vld [vmem:[%s1354_s22 + $0x1f0] sm:$0xff]  ;;  %v291_v11 = vld [vmem:[%s1348_s20 + $0xb8] sm:$0xff] }
  0x9b   : > { %v688_v41 = vadd.f32 %v687_v33, %v609_v21  ;;  %vm426_vm3 = vcmp.ne.f32.partialorder %v362_v27, -1.0  ;;  %vm434_vm4 = vcmp.ne.f32.partialorder %v370_v28, -1.0  ;;  %v322_v45 = vld [vmem:[%s1348_s20 + $0x1b0] sm:$0xff]  ;;  %vm442_vm5 = vcmp.ne.f32.partialorder %v378_v36, -1.0  ;;  %v355_v12 = vld [vmem:[%s1354_s22 + $0xb8] sm:$0xff] }
  0x9c   : > { %v686_v40 = vadd.f32 %v685_v30, %v1518_v51  ;;  %v466_v46 = vsub.f32 %v274_v25, %v338_v22  ;;  %v474_v47 = vsub.f32 %v282_v34, %v346_v16  ;;  %v482_v49 = vsub.f32 %v290_v35, %v354_v23  ;;  %v330_v53 = vld [vmem:[%s1348_s20 + $0x1f0] sm:$0xff]  ;;  %v299_v19 = vld [vmem:[%s1348_s20 + $0xf8] sm:$0xff] }
  0x9d   : > { %v689_v52 = vadd.f32 %v688_v41, %v617_v24  ;;  %v490_v54 = vsub.f32 %v298_v38, %v362_v27  ;;  %v498_v55 = vsub.f32 %v306_v39, %v370_v28  ;;  %vm450_vm6 = vcmp.ne.f32.partialorder %v386_v43, -1.0  ;;  %v363_v20 = vld [vmem:[%s1354_s22 + $0xf8] sm:$0xff] }
  0x9e   : > { %v712_v50 = vadd.f32 %v686_v40, %v264_v37  ;;  %vm458_vm7 = vcmp.ne.f32.partialorder %v394_v44, -1.0  ;;  %v506_v51 = vsub.f32 %v314_v42, %v378_v36  ;;  %v530_v48 = vsel %vm402_vm0, %v466_v46, 0.0  ;;  %v307_v16 = vld [vmem:[%s1348_s20 + $0x138] sm:$0xff] }
  0x9f   : > { %v690_v56 = vadd.f32 %v689_v52, %v625_v26  ;;  %v514_v57 = vsub.f32 %v322_v45, %v386_v43  ;;  %v538_v58 = vsel %vm410_vm1, %v474_v47, 0.0  ;;  %v546_v59 = vsel %vm418_vm2, %v482_v49, 0.0  ;;  %v371_v23 = vld [vmem:[%s1354_s22 + $0x138] sm:$0xff] }
  0xa0   : > { %720 = vst [vmem:[%s1363_s7 + $0x20] sm:$0xff] %v712_v50  ;;  %v522_v60 = vsub.f32 %v330_v53, %v394_v44  ;;  %v554_v61 = vsel %vm426_vm3, %v490_v54, 0.0  ;;  %v562_v62 = vsel %vm434_vm4, %v498_v55, 0.0  ;;  %v570_v63 = vsel %vm442_vm5, %v506_v51, 0.0  ;;  %v315_v30 = vld [vmem:[%s1348_s20 + $0x178] sm:$0xff]  ;;  %v266_v51 = vld [vmem:[%s1363_s7 + $0x30] sm:$0xff] }
  0xa1   : > { %v691_v0 = vadd.f32 %v690_v56, %v633_v31  ;;  %v594_v2 = vmul.f32 %v530_v48, %v530_v48  ;;  %v602_v3 = vmul.f32 %v538_v58, %v538_v58  ;;  %v610_v4 = vmul.f32 %v546_v59, %v546_v59  ;;  %v379_v31 = vld [vmem:[%s1354_s22 + $0x178] sm:$0xff] }
  0xa2   : > { %v618_v1 = vmul.f32 %v554_v61, %v554_v61  ;;  %v578_v14 = vsel %vm450_vm6, %v514_v57, 0.0  ;;  %v586_v15 = vsel %vm458_vm7, %v522_v60, 0.0  ;;  %v626_v17 = vmul.f32 %v562_v62, %v562_v62  ;;  %v323_v37 = vld [vmem:[%s1348_s20 + $0x1b8] sm:$0xff] }
  0xa3   : > { %v692_v8 = vadd.f32 %v691_v0, %v641_v32  ;;  %v694_v9 = vadd.f32 %v602_v3, %v594_v2  ;;  %v634_v18 = vmul.f32 %v570_v63, %v570_v63  ;;  %vm403_vm8 = vcmp.ne.f32.partialorder %v339_v6, -1.0  ;;  %v331_v44 = vld [vmem:[%s1348_s20 + $0x1f8] sm:$0xff] }
  0xa4   : > { %vm411_vm9 = vcmp.ne.f32.partialorder %v347_v7, -1.0  ;;  %vm419_vm10 = vcmp.ne.f32.partialorder %v355_v12, -1.0  ;;  %v467_v24 = vsub.f32 %v275_v5, %v339_v6  ;;  %v475_v26 = vsub.f32 %v283_v10, %v347_v7  ;;  %v395_v45 = vld [vmem:[%s1354_s22 + $0x1f8] sm:$0xff] }
  0xa5   : > { %v693_v21 = vadd.f32 %v692_v8, %v649_v29  ;;  %v695_v22 = vadd.f32 %v694_v9, %v610_v4  ;;  %v483_v25 = vsub.f32 %v291_v11, %v355_v12  ;;  %vm427_vm11 = vcmp.ne.f32.partialorder %v363_v20, -1.0  ;;  %v387_v29 = vld [vmem:[%s1354_s22 + $0x1b8] sm:$0xff] }
  0xa6   : > { %v491_v32 = vsub.f32 %v299_v19, %v363_v20  ;;  %v642_v33 = vmul.f32 %v578_v14, %v578_v14  ;;  %v499_v34 = vsub.f32 %v307_v16, %v371_v23  ;;  %v531_v35 = vsel %vm403_vm8, %v467_v24, 0.0  ;;  %v267_v7 = vld [vmem:[%s1363_s7 + $0x38] sm:$0xff] }
  0xa7   : > { %v713_v27 = vadd.f32 %v693_v21, %v265_v13  ;;  %v696_v28 = vadd.f32 %v695_v22, %v618_v1  ;;  %vm435_vm12 = vcmp.ne.f32.partialorder %v371_v23, -1.0  ;;  %v539_v38 = vsel %vm411_vm9, %v475_v26, 0.0 }
  0xa8   : > { %v547_v39 = vsel %vm419_vm10, %v483_v25, 0.0  ;;  %v650_v40 = vmul.f32 %v586_v15, %v586_v15  ;;  %vm443_vm13 = vcmp.ne.f32.partialorder %v379_v31, -1.0  ;;  %v507_v41 = vsub.f32 %v315_v30, %v379_v31 }
  0xa9   : > { %721 = vst [vmem:[%s1363_s7 + $0x28] sm:$0xff] %v713_v27  ;;  %v697_v36 = vadd.f32 %v696_v28, %v626_v17  ;;  %v555_v42 = vsel %vm427_vm11, %v491_v32, 0.0  ;;  %v595_v46 = vmul.f32 %v531_v35, %v531_v35  ;;  %v603_v47 = vmul.f32 %v539_v38, %v539_v38 }
  0xaa   : > { %v611_v49 = vmul.f32 %v547_v39, %v547_v39  ;;  %v515_v50 = vsub.f32 %v323_v37, %v387_v29  ;;  %v563_v52 = vsel %vm435_vm12, %v499_v34, 0.0  ;;  %vm451_vm14 = vcmp.ne.f32.partialorder %v387_v29, -1.0 }
  0xab   : > { %v698_v43 = vadd.f32 %v697_v36, %v634_v18  ;;  %v619_v54 = vmul.f32 %v555_v42, %v555_v42  ;;  %v701_v55 = vadd.f32 %v603_v47, %v595_v46  ;;  %v523_v48 = vsub.f32 %v331_v44, %v395_v45 }
  0xac   : > { %v571_v56 = vsel %vm443_vm13, %v507_v41, 0.0  ;;  %vm459_vm15 = vcmp.ne.f32.partialorder %v395_v45, -1.0  ;;  %v627_v58 = vmul.f32 %v563_v52, %v563_v52  ;;  %v579_v60 = vsel %vm451_vm14, %v515_v50, 0.0 }
  0xad   : > { %v699_v53 = vadd.f32 %v698_v43, %v642_v33  ;;  %v702_v59 = vadd.f32 %v701_v55, %v611_v49  ;;  %v635_v62 = vmul.f32 %v571_v56, %v571_v56  ;;  %v587_v0 = vsel %vm459_vm15, %v523_v48, 0.0 }
  0xae   : > { %v643_v2 = vmul.f32 %v579_v60, %v579_v60  ;;  %v651_v4 = vmul.f32 %v587_v0, %v587_v0 }
  0xaf   : > { %v700_v57 = vadd.f32 %v699_v53, %v650_v40  ;;  %v703_v63 = vadd.f32 %v702_v59, %v619_v54 }
  0xb1   : > { %v714_v61 = vadd.f32 %v700_v57, %v266_v51  ;;  %v704_v3 = vadd.f32 %v703_v63, %v627_v58 }
  0xb3   : > { %722 = vst [vmem:[%s1363_s7 + $0x30] sm:$0xff] %v714_v61  ;;  %v705_v5 = vadd.f32 %v704_v3, %v635_v62 }
  0xb5   : > { %v706_v6 = vadd.f32 %v705_v5, %v643_v2 }
  0xb7   : > { %v707_v8 = vadd.f32 %v706_v6, %v651_v4 }
  0xb9   : > { %v715_v1 = vadd.f32 %v707_v8, %v267_v7 }
  0xbb   : > { %723 = vst [vmem:[%s1363_s7 + $0x38] sm:$0xff] %v715_v1 }
  0xbc   : > { %1055 = shalt.err (!%p1052_p5)
}
  0xbd   : > { %s1056_s26 = scalar_lea.hbm %s1594_s30, 1024  ;;  %s1060_s25 = scalar_lea.hbm %s1663_s2, 2048 }
  0xbe   : > { %p1057_p12 = scmp.ne.s32.totalorder %s1594_s30, %s1056_s26  ;;  %p1061_p1 = scmp.lt.s32.totalorder %s1594_s30, %s1663_s2 }
  0xbf   : > { %p1062_p6 = scmp.lt.s32.totalorder %s1060_s25, %s1056_s26 }
  0xc0   : > { %p1058_p13 = pnand %p1057_p12, %p1295_p2 }
  0xc1   : > { %p1063_p9 = por %p1062_p6, %p1061_p1 }
  0xc2   : > { %p1059_p0 = pneg %p1058_p13 }
  0xc4   : > { %p1064_p7 = pnand %p1063_p9, %p1059_p0 }
  0xc6   : > { %1067 = shalt.err (!%p1064_p7)
}
  0xc7   : > { %s1174_s14 = smov 128   ;;  %s1175_s22 = smov 8  }
  0xc8   : > { %878 = dma.vmem_to_hbm [thread:$0]  (%p1295_p2), %s1596_s3, 1024, %s1594_s30, %s1601_s29, %s1174_s14, %s1174_s14, %s1175_s22  }
  0xc9 PF: > { %p892_p4 = scmp.ge.s32.totalorder %s1166_s19, 2  ;;  %s753_s0 = sand.u32 1, %s1126_s9  }
  0xca   : > { %s754_s17 = scalar_lea.sflag [#allocation4], %s753_s0 }
  0xcb   : > { %p888_p8 = pnand %p892_p4, %p1299_p3 }
  0xcd   : > { %p889_p10 = pneg %p888_p8 }
  0xcf   : > { %1121 = dma.done.wait (%p889_p10), %s754_s17, 1024  }
  0xd0   : > { %1123 = vsyncadd (%p889_p10), %s754_s17, 4294966272  ;;  %s21_s19 = sadd.s32 1, %s1166_s19   ;;  %s1685_s8 = sld [smem:[#allocation11_spill]] }
  0xd1   : > { %p18_p11 = scmp.ge.s32.totalorder %s21_s19, 6   ;;  %s1686_s14 = sld [smem:[#allocation16_spill]] }
  0xd2   : > { %s1687_s15 = sld [smem:[#allocation12_spill]]  ;;  %s1691_s9 = smov %s1130_s10 }
  0xd3   : > { %s1688_s16 = sld [smem:[#allocation13_spill]]  ;;  %s1692_s10 = smov %s1134_s11 }
  0xd4   : > { %s1689_s17 = sld [smem:[#allocation14_spill]]  ;;  %s1693_s11 = smov %s1281_s5 }
  0xd5   : > { %s1690_s18 = sld [smem:[#allocation15_spill]]  ;;  %s1694_s12 = smov %s1142_s13 }
  0xd6   : > { %s1695_s13 = smov %s1685_s8  ;;  %20 = sbr.rel (!%p18_p11) target bundleno = 13 (0xd), region = 90 }
  0xdb   :  { %759 = vsyncpa [#allocation3], 1 }
  0xdc   :  { %761 = vsyncpa [#allocation3 + $0x1], 1 }
  0xdd   :  { %762 = vsyncpa [#allocation6], 1 }
  0xde   :  { %764 = vsyncpa [#allocation6 + $0x1], 1 }
  0xdf   :  { %765 = vsyncpa [#allocation4], 1 }
  0xe0   :  { %767 = vsyncpa [#allocation4 + $0x1], 1 }

</bundles_post_ra>
